<compile_context>
chip_gen: v7x
topology: tpu7x:2x2x1
jax: 0.10.0
libtpu: 0.0.40
codegen_flags: <defaults>
</compile_context>

<pallas_src>
import math
import functools
import numpy as np
import jax
import jax.numpy as jnp
from jax.experimental import pallas as pl
from jax.experimental.pallas import tpu as pltpu


# ---------------- DT structure generation (deterministic, plain numpy, init-time) -----
def generate_complete_binary_tree(num_leaf, dim_out):
    leaf_action = [0] * dim_out
    height = math.ceil(math.log2(num_leaf))
    leaf_nodes_lists = []
    stack = [(0, [], [])]
    controller_num = 0
    while stack:
        node, left_parents, right_parents = stack.pop()
        left_child = 2 * node + 1
        right_child = 2 * node + 2
        if len(left_parents) + len(right_parents) >= height:
            leaf_act = leaf_action.copy()
            leaf_act[controller_num] = 1
            controller_num += 1
            if controller_num == dim_out:
                controller_num = 0
            leaf_nodes_lists.append([left_parents, right_parents, leaf_act])
        else:
            stack.append((right_child, left_parents.copy(), right_parents + [node]))
            stack.append((left_child, left_parents + [node], right_parents.copy()))
    assert len(leaf_nodes_lists) == num_leaf, "wrong number of leaves"
    return leaf_nodes_lists


def leaves_to_weight(init_leaves, num_nodes):
    num_leaves = len(init_leaves)
    L = np.zeros((num_leaves, 2 * num_nodes))
    A = np.zeros(num_leaves)
    for ix, leaf in enumerate(init_leaves):
        if len(leaf[0]) > 0:
            L[ix][leaf[0]] = 1
        if len(leaf[1]) > 0:
            L[ix][[nx + num_nodes for nx in leaf[1]]] = 1
        dont_cares = set(range(num_nodes)) - set(leaf[0] + leaf[1])
        if len(dont_cares) > 0:
            L[ix][list(dont_cares)] = 1
            L[ix][[nx + num_nodes for nx in dont_cares]] = 1
        A[ix] = np.argmax(leaf[-1])
    return L, A


# -------------------------------- Pallas kernel ---------------------------------------
def _dtsemnet_kernel(x_ref, w1_ref, b1_ref, lp_ref, lm_ref, gb_ref, out_ref, *, num_groups):
    # x_ref : (tb, D)    input tile (native dtype, cast to bf16 in-kernel)
    # w1_ref: (D, N)     linear1 weight, transposed (bf16)
    # b1_ref: (1, N)     linear1 bias (f32)
    # lp_ref: (N, Lv)    L[:, :N].T   (reluP half of fixed linear2, f32)
    # lm_ref: (N, Lv)    L[:, N:].T   (reluM half of fixed linear2, f32)
    # gb_ref: (G, Lv)    additive group-exclusion bias: 0 in-group, -1e30 out-of-group
    x = x_ref[...].astype(jnp.bfloat16)          # cast in-kernel: HBM only sees one read of x
    z = jnp.dot(x, w1_ref[...], preferred_element_type=jnp.float32) + b1_ref[...]
    hp = jnp.maximum(z, 0.0)                     # reluP(z)
    hm = jnp.maximum(-z, 0.0)                    # reluM(-z)
    # linear2 (bias-free, fixed L) applied to cat([hp, hm]) == hp @ Lp + hm @ Lm
    leaves = (jnp.dot(hp, lp_ref[...], preferred_element_type=jnp.float32)
              + jnp.dot(hm, lm_ref[...], preferred_element_type=jnp.float32))
    # MaxPoolLayer: per-group max over leaves (groups static, unrolled; exclusion bias
    # precomputed host-side -> just add + row-max). All columns assembled, stored once.
    cols = []
    for gi in range(num_groups):
        cols.append(jnp.max(leaves + gb_ref[gi:gi + 1, :], axis=-1, keepdims=True))
    out_ref[...] = jnp.concatenate(cols, axis=-1)


# ------------------------------- planning helpers --------------------------------------
_LANE, _SUB = 128, 8


def _round_up(v, m):
    return ((v + m - 1) // m) * m


def _tpu_vmem_info():
    """Generation-aware VMEM cap and multi-TensorCore detection."""
    phys = 64 << 20                          # conservative fallback (v7x per-core VMEM)
    try:
        info = pltpu.get_tpu_info()
        v = int(getattr(info, "vmem_capacity_bytes", 0) or 0)
        if v > 0:
            phys = v
    except Exception:
        pass
    cap = min(phys // 2, 64 << 20)           # scoped limit: ~64 MiB v5e/v6e, ~32 MiB v7x
    multi_tc = phys < (96 << 20)             # v7x exposes 64 MiB per TC (2 TCs per chip)
    return cap, multi_tc


def _plan_batch_tile(B, D, N, Lv, G, block_b):
    cap, multi_tc = _tpu_vmem_info()
    n_pad = _round_up(N, _LANE)
    lv_pad = _round_up(Lv, _LANE)
    g_pad = _round_up(G, _LANE)
    # grid-invariant operands (double-buffered by the default pipeline; tiny here)
    static = 2 * (D * n_pad * 2                         # w1 (bf16)
                  + _SUB * n_pad * 4                    # b1
                  + 2 * _round_up(N, _SUB) * lv_pad * 4  # lp, lm
                  + _round_up(G, _SUB) * lv_pad * 4)    # gbias
    # per-batch-row VMEM: x tile (native f32, double-buffered) + bf16 copy +
    # z/hp/hm + leaves/masked temp + lane-padded out tile (double-buffered)
    per_row = 2 * D * 4 + D * 2 + 3 * n_pad * 4 + 2 * lv_pad * 4 + 2 * g_pad * 4
    budget = max(cap - static - (4 << 20), 1 << 20)
    eff_b_vmem = max(_SUB, (budget * 4 // 5) // per_row // _SUB * _SUB)   # 25% fudge
    eff_b = min(block_b, eff_b_vmem, _round_up(B, _SUB))
    if multi_tc and B >= 2 * _SUB:
        # keep >=2 grid steps only where there are 2 TCs to shard the parallel axis over
        eff_b = min(eff_b, _round_up(-(-B // 2), _SUB))
    eff_b = max(_SUB, (eff_b // _SUB) * _SUB)
    return eff_b, cap


# --------------------------------- packing + forward ------------------------------------
def pack_dtsemnet_params(w1, b1, L, gmask):
    """One-time packing of module parameters for the kernel (jnp only, jit-safe)."""
    N = w1.shape[0]
    w1_t = jnp.asarray(w1, jnp.bfloat16).T                         # (D, N)
    b1_2d = jnp.asarray(b1, jnp.float32).reshape(1, N)             # (1, N)
    Lf = jnp.asarray(L, jnp.float32)
    lp = Lf[:, :N].T                                               # (N, Lv)  reluP half
    lm = Lf[:, N:].T                                               # (N, Lv)  reluM half
    gbias = (jnp.asarray(gmask, jnp.float32) - 1.0) * jnp.float32(1e30)   # (G, Lv)
    return w1_t, b1_2d, lp, lm, gbias


def dtsemnet_forward(x_nchw, params, *, block_b=2048):
    w1_t, b1_2d, lp, lm, gbias = params
    B = x_nchw.shape[0]
    D = int(np.prod(x_nchw.shape[1:]))
    N = w1_t.shape[1]
    Lv = lp.shape[1]
    G = gbias.shape[0]
    x2d = jnp.reshape(x_nchw, (B, D))      # contiguous view; matches PyTorch .view(B, -1)

    eff_b, vmem_cap = _plan_batch_tile(B, D, N, Lv, G, block_b)
    grid_n = pl.cdiv(B, eff_b)             # ragged tail handled by partial-block masking

    kernel = functools.partial(_dtsemnet_kernel, num_groups=G)
    return pl.pallas_call(
        kernel,
        out_shape=jax.ShapeDtypeStruct((B, G), jnp.float32),
        grid=(grid_n,),
        in_specs=[
            pl.BlockSpec((eff_b, D), lambda i: (i, 0)),   # x tile over batch
            pl.BlockSpec((D, N), lambda i: (0, 0)),       # resident (tiny) weights
            pl.BlockSpec((1, N), lambda i: (0, 0)),
            pl.BlockSpec((N, Lv), lambda i: (0, 0)),
            pl.BlockSpec((N, Lv), lambda i: (0, 0)),
            pl.BlockSpec((G, Lv), lambda i: (0, 0)),
        ],
        out_specs=pl.BlockSpec((eff_b, G), lambda i: (i, 0)),
        compiler_params=pltpu.CompilerParams(
            dimension_semantics=("parallel",),
            vmem_limit_bytes=int(vmem_cap)),
    )(x2d, w1_t, b1_2d, lp, lm, gbias)


# ------------------------------ pure-JAX reference -------------------------------------
def reference_forward(x_nchw, w1, b1, L, node_groups):
    B = x_nchw.shape[0]
    x2d = jnp.asarray(x_nchw, jnp.float32).reshape(B, -1)
    z = x2d @ jnp.asarray(w1, jnp.float32).T + jnp.asarray(b1, jnp.float32)
    h = jnp.concatenate([jnp.maximum(z, 0.0), jnp.maximum(-z, 0.0)], axis=1)
    leaves = h @ jnp.asarray(L, jnp.float32).T
    cols = [jnp.max(leaves[:, grp], axis=1) for grp in node_groups]
    return jnp.stack(cols, axis=1)


if __name__ == "__main__":
    # Module config: in_dim = 4*16*16 = 1024, out_dim = 4, height = 3 (7 nodes, 8 leaves),
    # is_regression = False, over_param = [], custom_leaf = None.
    height = 3
    out_dim = 4
    batch, channels, spatial = 16, 4, 16
    in_dim = channels * spatial * spatial
    int_nodes = 2 ** height - 1
    leaf_nodes = 2 ** height

    # Fixed DT structure (deterministic, equivalent to the PyTorch __init__).
    init_leaves = generate_complete_binary_tree(num_leaf=leaf_nodes, dim_out=out_dim)
    L, A = leaves_to_weight(init_leaves, int_nodes)

    # MaxPoolLayer grouping.
    actions = np.unique(A)
    node_groups = [np.where(A == a)[0] for a in actions]
    num_groups = len(node_groups)
    gmask = np.zeros((num_groups, leaf_nodes), dtype=np.float32)
    for i, grp in enumerate(node_groups):
        gmask[i, grp] = 1.0

    # Deterministic parameter init (stand-in for nn.Linear default init).
    key = jax.random.PRNGKey(0)
    kx, kw, kb, kx2 = jax.random.split(key, 4)
    bound = 1.0 / math.sqrt(in_dim)
    w1 = jax.random.uniform(kw, (int_nodes, in_dim), jnp.float32, -bound, bound)
    b1 = jax.random.uniform(kb, (int_nodes,), jnp.float32, -bound, bound)

    params = pack_dtsemnet_params(w1, b1, L, gmask)   # packed once, outside the forward
    fwd = jax.jit(functools.partial(dtsemnet_forward, block_b=2048))

    # Example input (NCHW like PyTorch).
    x = jax.random.normal(kx, (batch, channels, spatial, spatial), jnp.float32)
    out = jax.block_until_ready(fwd(x, params))
    ref = jax.block_until_ready(reference_forward(x, w1, b1, L, node_groups))
    assert out.shape == (batch, out_dim), f"bad shape {out.shape}"
    # bf16 operands on the first matmul (f32 accumulate) -> loosened tolerance vs f32 ref.
    np.testing.assert_allclose(np.asarray(out), np.asarray(ref), rtol=2e-2, atol=2e-2)

    # Ragged batch (not a multiple of the tile): handled without any jnp.pad pass.
    xr = jax.random.normal(kx2, (19, channels, spatial, spatial), jnp.float32)
    out_r = jax.block_until_ready(fwd(xr, params))
    ref_r = jax.block_until_ready(reference_forward(xr, w1, b1, L, node_groups))
    assert out_r.shape == (19, out_dim), f"bad shape {out_r.shape}"
    np.testing.assert_allclose(np.asarray(out_r), np.asarray(ref_r), rtol=2e-2, atol=2e-2)

    print("KERNEL_OK")
</pallas_src>

<mosaic_0001>
module attributes {stable_mosaic.version = 11 : i64} {
  func.func @_dtsemnet_kernel(%arg0: i32, %arg1: memref<8x1024xf32, #tpu.memory_space<vmem>>, %arg2: memref<1024x7xbf16, #tpu.memory_space<vmem>>, %arg3: memref<1x7xf32, #tpu.memory_space<vmem>>, %arg4: memref<7x8xf32, #tpu.memory_space<vmem>>, %arg5: memref<7x8xf32, #tpu.memory_space<vmem>>, %arg6: memref<4x8xf32, #tpu.memory_space<vmem>>, %arg7: memref<8x4xf32, #tpu.memory_space<vmem>>) attributes {dimension_semantics = [#tpu.dimension_semantics<parallel>], iteration_bounds = array<i64: 2>, scalar_prefetch = 0 : i64, scratch_operands = 0 : i64, tpu.core_type = #tpu.core_type<tc>, window_params = [{transform_indices = @transform_0, window_bounds = array<i64: 8, 1024>}, {pipeline_mode = #tpu.pipeline_mode<synchronous>, transform_indices = @transform_1, window_bounds = array<i64: 1024, 7>}, {pipeline_mode = #tpu.pipeline_mode<synchronous>, transform_indices = @transform_2, window_bounds = array<i64: 1, 7>}, {pipeline_mode = #tpu.pipeline_mode<synchronous>, transform_indices = @transform_3, window_bounds = array<i64: 7, 8>}, {pipeline_mode = #tpu.pipeline_mode<synchronous>, transform_indices = @transform_4, window_bounds = array<i64: 7, 8>}, {pipeline_mode = #tpu.pipeline_mode<synchronous>, transform_indices = @transform_5, window_bounds = array<i64: 4, 8>}, {transform_indices = @transform_6, window_bounds = array<i64: 8, 4>}]} {
    %c0 = arith.constant 0 : index
    %c0_0 = arith.constant 0 : index
    %0 = vector.load %arg1[%c0, %c0_0] : memref<8x1024xf32, #tpu.memory_space<vmem>>, vector<8x1024xf32>
    %1 = arith.truncf %0 : vector<8x1024xf32> to vector<8x1024xbf16>
    %c0_1 = arith.constant 0 : index
    %c0_2 = arith.constant 0 : index
    %2 = vector.load %arg2[%c0_1, %c0_2] : memref<1024x7xbf16, #tpu.memory_space<vmem>>, vector<1024x7xbf16>
    %cst = arith.constant dense<0.000000e+00> : vector<8x7xf32>
    %3 = tpu.matmul %1, %2, %cst {dimension_numbers = #tpu.dot_dimension_numbers<[1], [0], [0], [1], [0, 0, 1, 1], [], []>} : vector<8x1024xbf16>, vector<1024x7xbf16>, vector<8x7xf32> -> vector<8x7xf32>
    %c0_3 = arith.constant 0 : index
    %c0_4 = arith.constant 0 : index
    %4 = vector.load %arg3[%c0_3, %c0_4] : memref<1x7xf32, #tpu.memory_space<vmem>>, vector<1x7xf32>
    %5 = vector.broadcast %4 : vector<1x7xf32> to vector<8x7xf32>
    %6 = arith.addf %3, %5 : vector<8x7xf32>
    %cst_5 = arith.constant 0.000000e+00 : f32
    %7 = vector.broadcast %cst_5 : f32 to vector<8x7xf32>
    %8 = arith.maximumf %6, %7 : vector<8x7xf32>
    %cst_6 = arith.constant 0.000000e+00 : f32
    %9 = vector.broadcast %cst_6 : f32 to vector<8x7xf32>
    %10 = arith.subf %9, %6 : vector<8x7xf32>
    %cst_7 = arith.constant 0.000000e+00 : f32
    %11 = vector.broadcast %cst_7 : f32 to vector<8x7xf32>
    %12 = arith.maximumf %10, %11 : vector<8x7xf32>
    %c0_8 = arith.constant 0 : index
    %c0_9 = arith.constant 0 : index
    %13 = vector.load %arg4[%c0_8, %c0_9] : memref<7x8xf32, #tpu.memory_space<vmem>>, vector<7x8xf32>
    %cst_10 = arith.constant dense<0.000000e+00> : vector<8x8xf32>
    %14 = tpu.matmul %8, %13, %cst_10 {dimension_numbers = #tpu.dot_dimension_numbers<[1], [0], [0], [1], [0, 0, 1, 1], [], []>} : vector<8x7xf32>, vector<7x8xf32>, vector<8x8xf32> -> vector<8x8xf32>
    %c0_11 = arith.constant 0 : index
    %c0_12 = arith.constant 0 : index
    %15 = vector.load %arg5[%c0_11, %c0_12] : memref<7x8xf32, #tpu.memory_space<vmem>>, vector<7x8xf32>
    %cst_13 = arith.constant dense<0.000000e+00> : vector<8x8xf32>
    %16 = tpu.matmul %12, %15, %cst_13 {dimension_numbers = #tpu.dot_dimension_numbers<[1], [0], [0], [1], [0, 0, 1, 1], [], []>} : vector<8x7xf32>, vector<7x8xf32>, vector<8x8xf32> -> vector<8x8xf32>
    %17 = arith.addf %14, %16 : vector<8x8xf32>
    %c0_14 = arith.constant 0 : index
    %c0_15 = arith.constant 0 : index
    %18 = vector.load %arg6[%c0_14, %c0_15] : memref<4x8xf32, #tpu.memory_space<vmem>>, vector<1x8xf32>
    %19 = vector.broadcast %18 : vector<1x8xf32> to vector<8x8xf32>
    %20 = arith.addf %17, %19 : vector<8x8xf32>
    %cst_16 = arith.constant dense<0xFF800000> : vector<8xf32>
    %21 = vector.multi_reduction <maximumf>, %20, %cst_16 [1] : vector<8x8xf32> to vector<8xf32>
    %22 = vector.shape_cast %21 : vector<8xf32> to vector<8x1xf32>
    %c1 = arith.constant 1 : index
    %c0_17 = arith.constant 0 : index
    %23 = vector.load %arg6[%c1, %c0_17] : memref<4x8xf32, #tpu.memory_space<vmem>>, vector<1x8xf32>
    %24 = vector.broadcast %23 : vector<1x8xf32> to vector<8x8xf32>
    %25 = arith.addf %17, %24 : vector<8x8xf32>
    %cst_18 = arith.constant dense<0xFF800000> : vector<8xf32>
    %26 = vector.multi_reduction <maximumf>, %25, %cst_18 [1] : vector<8x8xf32> to vector<8xf32>
    %27 = vector.shape_cast %26 : vector<8xf32> to vector<8x1xf32>
    %c2 = arith.constant 2 : index
    %c0_19 = arith.constant 0 : index
    %28 = vector.load %arg6[%c2, %c0_19] : memref<4x8xf32, #tpu.memory_space<vmem>>, vector<1x8xf32>
    %29 = vector.broadcast %28 : vector<1x8xf32> to vector<8x8xf32>
    %30 = arith.addf %17, %29 : vector<8x8xf32>
    %cst_20 = arith.constant dense<0xFF800000> : vector<8xf32>
    %31 = vector.multi_reduction <maximumf>, %30, %cst_20 [1] : vector<8x8xf32> to vector<8xf32>
    %32 = vector.shape_cast %31 : vector<8xf32> to vector<8x1xf32>
    %c3 = arith.constant 3 : index
    %c0_21 = arith.constant 0 : index
    %33 = vector.load %arg6[%c3, %c0_21] : memref<4x8xf32, #tpu.memory_space<vmem>>, vector<1x8xf32>
    %34 = vector.broadcast %33 : vector<1x8xf32> to vector<8x8xf32>
    %35 = arith.addf %17, %34 : vector<8x8xf32>
    %cst_22 = arith.constant dense<0xFF800000> : vector<8xf32>
    %36 = vector.multi_reduction <maximumf>, %35, %cst_22 [1] : vector<8x8xf32> to vector<8xf32>
    %37 = vector.shape_cast %36 : vector<8xf32> to vector<8x1xf32>
    %38 = tpu.concatenate %22, %27, %32, %37 in 1 : vector<8x1xf32>, vector<8x1xf32>, vector<8x1xf32>, vector<8x1xf32> -> vector<8x4xf32>
    %c0_23 = arith.constant 0 : index
    %c0_24 = arith.constant 0 : index
    %39 = vector.load %arg7[%c0_23, %c0_24] : memref<8x4xf32, #tpu.memory_space<vmem>>, vector<8x4xf32>
    tpu.vector_store %arg7[%c0_23, %c0_24], %38 {strides = array<i32>} : memref<8x4xf32, #tpu.memory_space<vmem>>, vector<8x4xf32>,
    return
  }
  func.func @transform_0(%arg0: i32) -> (i32, i32) {
    %c0_i32 = arith.constant 0 : i32
    %c0_i32_0 = arith.constant 0 : i32
    return %arg0, %c0_i32 : i32, i32
  }
  func.func @transform_1(%arg0: i32) -> (i32, i32) {
    %c0_i32 = arith.constant 0 : i32
    %c0_i32_0 = arith.constant 0 : i32
    %c0_i32_1 = arith.constant 0 : i32
    return %c0_i32, %c0_i32_0 : i32, i32
  }
  func.func @transform_2(%arg0: i32) -> (i32, i32) {
    %c0_i32 = arith.constant 0 : i32
    %c0_i32_0 = arith.constant 0 : i32
    %c0_i32_1 = arith.constant 0 : i32
    return %c0_i32, %c0_i32_0 : i32, i32
  }
  func.func @transform_3(%arg0: i32) -> (i32, i32) {
    %c0_i32 = arith.constant 0 : i32
    %c0_i32_0 = arith.constant 0 : i32
    %c0_i32_1 = arith.constant 0 : i32
    return %c0_i32, %c0_i32_0 : i32, i32
  }
  func.func @transform_4(%arg0: i32) -> (i32, i32) {
    %c0_i32 = arith.constant 0 : i32
    %c0_i32_0 = arith.constant 0 : i32
    %c0_i32_1 = arith.constant 0 : i32
    return %c0_i32, %c0_i32_0 : i32, i32
  }
  func.func @transform_5(%arg0: i32) -> (i32, i32) {
    %c0_i32 = arith.constant 0 : i32
    %c0_i32_0 = arith.constant 0 : i32
    %c0_i32_1 = arith.constant 0 : i32
    return %c0_i32, %c0_i32_0 : i32, i32
  }
  func.func @transform_6(%arg0: i32) -> (i32, i32) {
    %c0_i32 = arith.constant 0 : i32
    %c0_i32_0 = arith.constant 0 : i32
    return %arg0, %c0_i32 : i32, i32
  }
}

</mosaic_0001>

<bundles_post_ra>
// kernel: dtsemnet_forward.1
= control target key start
LH: loop header
LB: loop body
LE: loop exit
PB: predicated region body
PF: predicated region fallthrough
CT: control target
= control target key end

     0   :  { %s1509_s21 = smov 0   ;;  %s1757_s0 = inlined_call_operand.vmem [shape: f32[16,1024], index: 0, kind: input, shape index: {}]   ;;  %s1758_s1 = inlined_call_operand.vmem [shape: bf16[1024,7], index: 1, kind: input, shape index: {}]   ;;  %s1759_s2 = inlined_call_operand.vmem [shape: f32[1,7], index: 2, kind: input, shape index: {}]   ;;  %s1760_s3 = inlined_call_operand.vmem [shape: f32[7,8], index: 3, kind: input, shape index: {}]   ;;  %s1761_s4 = inlined_call_operand.vmem [shape: f32[7,8], index: 4, kind: input, shape index: {}]   ;;  %s1762_s5 = inlined_call_operand.vmem [shape: f32[4,8], index: 5, kind: input, shape index: {}]   ;;  %s1763_s6 = inlined_call_operand.vmem [shape: f32[16,4], index: 6, kind: output, shape index: {}]  }
   0x1 LB: > { %s1203_s22 = sadd.s32 4294967295, %s1470_s21   ;;  %p1207_p0 = scmp.ge.s32.totalorder %s1470_s21, 1  ;;  %s1470_s21 = sphi %s1509_s21, %s16_s21  }
   0x2   : > { %p212_p1 = scmp.lt.s32.totalorder %s1470_s21, 3 }
   0x4   : > { %p213_p2 = pnand %p1207_p0, %p212_p1 }
   0x5   : > { %v1400_v0 = vld [vmem:[%s1758_s1 + $0x40] sm:$0xff] (!%p213_p2)   ;;  %v1404_v4 = vld [vmem:[%s1758_s1 + $0x48] sm:$0xff] (!%p213_p2)   ;;  %v1408_v8 = vld [vmem:[%s1758_s1 + $0x50] sm:$0xff] (!%p213_p2)   ;;  %p241_p3 = scmp.lt.s32.totalorder (!%p213_p2), %s1203_s22, 1  ;;  %vm955_vm0 = vcmask (!%p213_p2), 1046528   ;;  %vm1473_vm1 = vmmov (!%p213_p2), 0  }
   0x6   : > { %216 = sbr.rel (%p213_p2) target bundleno = 661 (0x295), region = 44  ;;  %v1401_v1 = vld [vmem:[%s1758_s1 + $0xc0] sm:$0xff] (!%p213_p2)   ;;  %1287 = vmatprep.subr.bf16.mxu0 (!%p213_p2), %v1400_v0  ;;  %v1405_v5 = vld [vmem:[%s1758_s1 + $0xc8] sm:$0xff] (!%p213_p2)   ;;  %v1409_v9 = vld [vmem:[%s1758_s1 + $0xd0] sm:$0xff] (!%p213_p2)   ;;  %vm951_vm2 = vcmask (!%p213_p2), 56320   ;;  %vm1111_vm3 = vcmask (!%p213_p2), 64512  }
   0x7   : > { %v1402_v2 = vld [vmem:[%s1758_s1] sm:$0xff] (!%p213_p2)   ;;  %1309 = vmatprep.subr.bf16.mxu1 (!%p213_p2), %v1401_v1  ;;  %v1406_v6 = vld [vmem:[%s1758_s1 + $0x8] sm:$0xff] (!%p213_p2)   ;;  %v1410_v10 = vld [vmem:[%s1758_s1 + $0x10] sm:$0xff] (!%p213_p2)   ;;  %vm1142_vm4 = vcmask (!%p213_p2), 7168   ;;  %vm1144_vm5 = vcmask (!%p213_p2), 15360   ;;  %vm1146_vm6 = vcmask (!%p213_p2), 23552  }
   0x8   : > { %v1403_v3 = vld [vmem:[%s1758_s1 + $0x80] sm:$0xff] (!%p213_p2)   ;;  %1288 = vmatpush3.bf16.msra.mxu0 (!%p213_p2), %v1402_v2  ;;  %v1407_v7 = vld [vmem:[%s1758_s1 + $0x88] sm:$0xff] (!%p213_p2)   ;;  %v1411_v11 = vld [vmem:[%s1758_s1 + $0x90] sm:$0xff] (!%p213_p2)   ;;  %vm1148_vm7 = vcmask (!%p213_p2), 31744  }
   0x9   : > { %1310 = vmatpush3.bf16.msra.mxu1 (!%p213_p2), %v1403_v3  ;;  %1289 = vmatprep.subr.bf16.mxu0 (!%p213_p2), %v1404_v4  ;;  %v1412_v12 = vld [vmem:[%s1758_s1 + $0x58] sm:$0xff] (!%p213_p2)   ;;  %v1416_v16 = vld [vmem:[%s1758_s1 + $0x60] sm:$0xff] (!%p213_p2)   ;;  %v1420_v20 = vld [vmem:[%s1758_s1 + $0x68] sm:$0xff] (!%p213_p2)  }
   0xa   : > { %1311 = vmatprep.subr.bf16.mxu1 (!%p213_p2), %v1405_v5  ;;  %v1413_v13 = vld [vmem:[%s1758_s1 + $0xd8] sm:$0xff] (!%p213_p2)   ;;  %v1417_v17 = vld [vmem:[%s1758_s1 + $0xe0] sm:$0xff] (!%p213_p2)   ;;  %v1421_v21 = vld [vmem:[%s1758_s1 + $0xe8] sm:$0xff] (!%p213_p2)  }
   0xb   : > { %v1414_v14 = vld [vmem:[%s1758_s1 + $0x18] sm:$0xff] (!%p213_p2)   ;;  %v1418_v18 = vld [vmem:[%s1758_s1 + $0x20] sm:$0xff] (!%p213_p2)   ;;  %v1422_v22 = vld [vmem:[%s1758_s1 + $0x28] sm:$0xff] (!%p213_p2)  }
   0xc   : > { %1290 = vmatpush3.bf16.msra.mxu0 (!%p213_p2), %v1406_v6  ;;  %v1415_v15 = vld [vmem:[%s1758_s1 + $0x98] sm:$0xff] (!%p213_p2)   ;;  %v1419_v19 = vld [vmem:[%s1758_s1 + $0xa0] sm:$0xff] (!%p213_p2)   ;;  %v1423_v23 = vld [vmem:[%s1758_s1 + $0xa8] sm:$0xff] (!%p213_p2)  }
   0xd   : > { %1312 = vmatpush3.bf16.msra.mxu1 %v1407_v7  ;;  %1291 = vmatprep.subr.bf16.mxu0 %v1408_v8  ;;  %s1765_s22 = smov (!%p241_p3, %s1203_s22), 1  ;;  %v1424_v24 = vld [vmem:[%s1758_s1 + $0x70] sm:$0xff]   ;;  %v1428_v28 = vld [vmem:[%s1758_s1 + $0x78] sm:$0xff]   ;;  %v1432_v40 = vld [vmem:[%s1758_s1 + $0x140] sm:$0xff]  }
   0xe   : > { %1313 = vmatprep.subr.bf16.mxu1 %v1409_v9  ;;  %v1425_v25 = vld [vmem:[%s1758_s1 + $0xf0] sm:$0xff]   ;;  %s1286_s9 = sshll.u32 %s1765_s22, 6  ;;  %v1429_v29 = vld [vmem:[%s1758_s1 + $0xf8] sm:$0xff]   ;;  %v1433_v41 = vld [vmem:[%s1758_s1 + $0x1c0] sm:$0xff]   ;;  %s1210_s15 = sshll.u32 %s1765_s22, 3 }
   0xf   : > { %v1426_v26 = vld [vmem:[%s1758_s1 + $0x30] sm:$0xff]   ;;  %s1617_s18 = scalar_lea.vmem %s1757_s0, %s1286_s9  ;;  %v1430_v30 = vld [vmem:[%s1758_s1 + $0x38] sm:$0xff]   ;;  %v1434_v42 = vld [vmem:[%s1758_s1 + $0x100] sm:$0xff]   ;;  %s249_s19 = scalar_lea.vmem %s1763_s6, %s1210_s15 }
  0x10   : > { %1292 = vmatpush3.bf16.msra.mxu0 %v1410_v10  ;;  %v1427_v27 = vld [vmem:[%s1758_s1 + $0xb0] sm:$0xff]   ;;  %v1431_v31 = vld [vmem:[%s1758_s1 + $0xb8] sm:$0xff]   ;;  %v252_v32 = vld [vmem:[%s1617_s18 + $0x8] sm:$0xff] }
  0x11   : > { %1314 = vmatpush3.bf16.msra.mxu1 %v1411_v11  ;;  %1293 = vmatprep.subr.bf16.mxu0 %v1412_v12  ;;  %v254_v33 = vld [vmem:[%s1617_s18 + $0x18] sm:$0xff]  ;;  %v251_v34 = vld [vmem:[%s1617_s18] sm:$0xff]  ;;  %v260_v35 = vpack.c.bf16 %v252_v32, %v252_v32  ;;  %v253_v38 = vld [vmem:[%s1617_s18 + $0x10] sm:$0xff] }
  0x12   : > { %1315 = vmatprep.subr.bf16.mxu1 %v1413_v13  ;;  %v262_v36 = vpack.c.bf16 %v254_v33, %v254_v33  ;;  %v259_v37 = vpack.c.bf16 %v251_v34, %v251_v34  ;;  %v261_v39 = vpack.c.bf16 %v253_v38, %v253_v38  ;;  %v1435_v43 = vld [vmem:[%s1758_s1 + $0x180] sm:$0xff]   ;;  %v1436_v44 = vld [vmem:[%s1758_s1 + $0x148] sm:$0xff]   ;;  %v1440_v48 = vld [vmem:[%s1758_s1 + $0x150] sm:$0xff]  }
  0x13   : > { %818 = vmatprep.mubr.bf16.mxu0 %v260_v35  ;;  %v1437_v45 = vld [vmem:[%s1758_s1 + $0x1c8] sm:$0xff]   ;;  %v1441_v49 = vld [vmem:[%s1758_s1 + $0x1d0] sm:$0xff]   ;;  %v1444_v52 = vld [vmem:[%s1758_s1 + $0x158] sm:$0xff]  }
  0x14   : > { %1294 = vmatpush3.bf16.msra.mxu0 %v1414_v14  ;;  %858 = vmatprep.mubr.bf16.mxu1 %v262_v36  ;;  %v1438_v46 = vld [vmem:[%s1758_s1 + $0x108] sm:$0xff]   ;;  %v1442_v50 = vld [vmem:[%s1758_s1 + $0x110] sm:$0xff]   ;;  %v1445_v53 = vld [vmem:[%s1758_s1 + $0x1d8] sm:$0xff]  }
  0x15   : > { %1316 = vmatpush3.bf16.msra.mxu1 %v1415_v15  ;;  %1295 = vmatprep.subr.bf16.mxu0 %v1416_v16  ;;  %v1439_v47 = vld [vmem:[%s1758_s1 + $0x188] sm:$0xff]   ;;  %v1443_v51 = vld [vmem:[%s1758_s1 + $0x190] sm:$0xff]   ;;  %v1446_v54 = vld [vmem:[%s1758_s1 + $0x118] sm:$0xff]   ;;  %v1472_v16 = vmov 0.0  }
  0x16   : > { %1317 = vmatprep.subr.bf16.mxu1 %v1417_v17  ;;  %v1447_v55 = vld [vmem:[%s1758_s1 + $0x198] sm:$0xff]   ;;  %v1448_v56 = vld [vmem:[%s1758_s1 + $0x160] sm:$0xff]   ;;  %v1452_v60 = vld [vmem:[%s1758_s1 + $0x168] sm:$0xff]  }
  0x17   : > { %v1449_v57 = vld [vmem:[%s1758_s1 + $0x1e0] sm:$0xff]   ;;  %v1453_v61 = vld [vmem:[%s1758_s1 + $0x1e8] sm:$0xff]   ;;  %v1456_v0 = vld [vmem:[%s1758_s1 + $0x170] sm:$0xff]  }
  0x18   : > { %1296 = vmatpush3.bf16.msra.mxu0 %v1418_v18  ;;  %v1450_v58 = vld [vmem:[%s1758_s1 + $0x120] sm:$0xff]   ;;  %v1454_v62 = vld [vmem:[%s1758_s1 + $0x128] sm:$0xff]   ;;  %v1457_v1 = vld [vmem:[%s1758_s1 + $0x1f0] sm:$0xff]  }
  0x19   : > { %1318 = vmatpush3.bf16.msra.mxu1 %v1419_v19  ;;  %1297 = vmatprep.subr.bf16.mxu0 %v1420_v20  ;;  %v1451_v59 = vld [vmem:[%s1758_s1 + $0x1a0] sm:$0xff]   ;;  %v1455_v63 = vld [vmem:[%s1758_s1 + $0x1a8] sm:$0xff]   ;;  %v1458_v2 = vld [vmem:[%s1758_s1 + $0x130] sm:$0xff]  }
  0x1a   : > { %1319 = vmatprep.subr.bf16.mxu1 %v1421_v21  ;;  %v1459_v3 = vld [vmem:[%s1758_s1 + $0x1b0] sm:$0xff]   ;;  %v1460_v4 = vld [vmem:[%s1758_s1 + $0x178] sm:$0xff]   ;;  %v256_v8 = vld [vmem:[%s1617_s18 + $0x28] sm:$0xff] }
  0x1b   : > { %v1461_v5 = vld [vmem:[%s1758_s1 + $0x1f8] sm:$0xff]   ;;  %v264_v10 = vpack.c.bf16 %v256_v8, %v256_v8  ;;  %v255_v12 = vld [vmem:[%s1617_s18 + $0x20] sm:$0xff]  ;;  %v257_v13 = vld [vmem:[%s1617_s18 + $0x30] sm:$0xff] }
  0x1c   : > { %1298 = vmatpush3.bf16.msra.mxu0 %v1422_v22  ;;  %v1462_v6 = vld [vmem:[%s1758_s1 + $0x138] sm:$0xff]   ;;  %v263_v14 = vpack.c.bf16 %v255_v12, %v255_v12  ;;  %v265_v15 = vpack.c.bf16 %v257_v13, %v257_v13  ;;  %v949_v17 = vld [vmem:[%s1760_s3] sm:$0x7f] }
  0x1d   : > { %1320 = vmatpush3.bf16.msra.mxu1 %v1423_v23  ;;  %1299 = vmatprep.subr.bf16.mxu0 %v1424_v24  ;;  %v1463_v7 = vld [vmem:[%s1758_s1 + $0x1b8] sm:$0xff]   ;;  %v950_v18 = vld [vmem:[%s1761_s4] sm:$0x7f] }
  0x1e   : > { %1321 = vmatprep.subr.bf16.mxu1 %v1425_v25  ;;  %v258_v9 = vld [vmem:[%s1617_s18 + $0x38] sm:$0xff]  ;;  %v1211_v21 = vld [vmem:[%s1759_s2] ss:$0 sm:$0xff] }
  0x1f   : > { %v266_v11 = vpack.c.bf16 %v258_v9, %v258_v9 }
  0x20   : > { %1300 = vmatpush3.bf16.msra.mxu0 %v1426_v26 }
  0x21   : > { %1322 = vmatpush3.bf16.msra.mxu1 %v1427_v27  ;;  %1301 = vmatprep.subr.bf16.mxu0 %v1428_v28 }
  0x22   : > { %1323 = vmatprep.subr.bf16.mxu1 %v1429_v29 }
  0x24   : > { %1302 = vmatpush3.bf16.msra.mxu0 %v1430_v30 }
  0x25   : > { %1324 = vmatpush3.bf16.msra.mxu1 %v1431_v31  ;;  %1331 = vmatprep.subr.bf16.mxu0 %v1432_v40 }
  0x26   : > { %1353 = vmatprep.subr.bf16.mxu1 %v1433_v41 }
  0x27   : > { %819 = vmatmul.mubr.bf16.vlgmr.msra.gmra.mrb[0].mxu0 %v259_v37 }
  0x28   : > { %859 = vmatmul.mubr.bf16.vlgmr.msra.gmra.mrb[0].mxu1 %v261_v39  ;;  %1332 = vmatpush3.bf16.msra.mxu0 %v1434_v42 }
  0x29   : > { %1354 = vmatpush3.bf16.msra.mxu1 %v1435_v43  ;;  %1333 = vmatprep.subr.bf16.mxu0 %v1436_v44 }
  0x2a   : > { %1355 = vmatprep.subr.bf16.mxu1 %v1437_v45  ;;  %898 = vmatprep.mubr.bf16.mxu0 %v264_v10 }
  0x2b   : > { %938 = vmatprep.mubr.bf16.mxu1 %v266_v11 }
  0x2c   : > { %1334 = vmatpush3.bf16.msra.mxu0 %v1438_v46 }
  0x2d   : > { %1356 = vmatpush3.bf16.msra.mxu1 %v1439_v47  ;;  %1335 = vmatprep.subr.bf16.mxu0 %v1440_v48 }
  0x2e   : > { %1357 = vmatprep.subr.bf16.mxu1 %v1441_v49 }
  0x30   : > { %1336 = vmatpush3.bf16.msra.mxu0 %v1442_v50  ;;  %v1282_v50 = vld [vmem:[%s1762_s5 + $0x2] ss:$0 sm:$0xff] }
  0x31   : > { %1358 = vmatpush3.bf16.msra.mxu1 %v1443_v51  ;;  %1337 = vmatprep.subr.bf16.mxu0 %v1444_v52  ;;  %v1280_v51 = vld [vmem:[%s1762_s5] ss:$0 sm:$0xff] }
  0x32   : > { %1359 = vmatprep.subr.bf16.mxu1 %v1445_v53 }
  0x34   : > { %1338 = vmatpush3.bf16.msra.mxu0 %v1446_v54  ;;  %v1283_v54 = vld [vmem:[%s1762_s5 + $0x3] ss:$0 sm:$0xff] }
  0x35   : > { %1360 = vmatpush3.bf16.msra.mxu1 %v1447_v55  ;;  %1339 = vmatprep.subr.bf16.mxu0 %v1448_v56  ;;  %v1281_v55 = vld [vmem:[%s1762_s5 + $0x1] ss:$0 sm:$0xff] }
  0x36   : > { %1361 = vmatprep.subr.bf16.mxu1 %v1449_v57 }
  0x38   : > { %1340 = vmatpush3.bf16.msra.mxu0 %v1450_v58 }
  0x39   : > { %1362 = vmatpush3.bf16.msra.mxu1 %v1451_v59  ;;  %1341 = vmatprep.subr.bf16.mxu0 %v1452_v60 }
  0x3a   : > { %1363 = vmatprep.subr.bf16.mxu1 %v1453_v61 }
  0x3c   : > { %1342 = vmatpush3.bf16.msra.mxu0 %v1454_v62 }
  0x3d   : > { %1364 = vmatpush3.bf16.msra.mxu1 %v1455_v63  ;;  %1343 = vmatprep.subr.bf16.mxu0 %v1456_v0 }
  0x3e   : > { %1365 = vmatprep.subr.bf16.mxu1 %v1457_v1 }
  0x40   : > { %1344 = vmatpush3.bf16.msra.mxu0 %v1458_v2 }
  0x41   : > { %1366 = vmatpush3.bf16.msra.mxu1 %v1459_v3  ;;  %1345 = vmatprep.subr.bf16.mxu0 %v1460_v4 }
  0x42   : > { %1367 = vmatprep.subr.bf16.mxu1 %v1461_v5 }
  0x44   : > { %1346 = vmatpush3.bf16.msra.mxu0 %v1462_v6 }
  0x45   : > { %1368 = vmatpush3.bf16.msra.mxu1 %v1463_v7  ;;  %1384 = vmatprep.subr.mxu0 %v1472_v16 }
  0x46   : > { %1379 = vmatprep.subr.mxu1 %v1472_v16 }
  0x47   : > { %899 = vmatmul.mubr.bf16.vlgmr.msra.gmra.mrb[4].mxu0 %v263_v14 }
  0x48   : > { %939 = vmatmul.mubr.bf16.vlgmr.msra.gmra.mrb[4].mxu1 %v265_v15  ;;  %1385 = vmatpush3.msk.msra.mxu0 %vm955_vm0, %v949_v17 }
  0x49   : > { %1386 = vmatprep.mubr.msk.f32.mxu0 %vm1473_vm1, %v1472_v16  ;;  %1380 = vmatpush3.msk.msra.mxu1 %vm955_vm0, %v950_v18 }
  0x4a   : > { %1381 = vmatprep.mubr.msk.f32.mxu1 %vm1473_vm1, %v1472_v16 }
  0xfa   : > { %v1303_v19 = vpop.f32.mrb[0].mxu0 }
  0xfb   : > { %v1325_v20 = vpop.f32.mrb[0].mxu1  ;;  %v1304_v22 = vpop.f32.mrb[1].mxu0 }
  0xfc   : > { %v1326_v23 = vpop.f32.mrb[1].mxu1  ;;  %v1305_v24 = vadd.f32 %v1304_v22, %v1303_v19  ;;  %v1306_v26 = vpop.f32.mrb[2].mxu0 }
  0xfd   : > { %v1327_v25 = vadd.f32 %v1326_v23, %v1325_v20  ;;  %v1328_v27 = vpop.f32.mrb[2].mxu1  ;;  %v1307_v28 = vpop.f32.mrb[3].mxu0 }
  0xfe   : > { %v1329_v29 = vpop.f32.mrb[3].mxu1  ;;  %v821_v30 = vadd.f32 %v1305_v24, %v1211_v21 }
 0x100   : > { %v861_v31 = vadd.f32 %v1327_v25, %v821_v30 }
 0x11a   : > { %v1347_v32 = vpop.f32.mrb[4].mxu0 }
 0x11b   : > { %v1369_v33 = vpop.f32.mrb[4].mxu1  ;;  %v1348_v34 = vpop.f32.mrb[5].mxu0 }
 0x11c   : > { %v1349_v35 = vadd.f32 %v1348_v34, %v1347_v32  ;;  %v1370_v36 = vpop.f32.mrb[5].mxu1  ;;  %v1350_v37 = vpop.f32.mrb[6].mxu0 }
 0x11d   : > { %v1371_v38 = vadd.f32 %v1370_v36, %v1369_v33  ;;  %v1372_v39 = vpop.f32.mrb[6].mxu1  ;;  %v1351_v40 = vpop.f32.mrb[7].mxu0 }
 0x11e   : > { %v901_v41 = vadd.f32 %v1349_v35, %v861_v31  ;;  %v1373_v42 = vpop.f32.mrb[7].mxu1 }
 0x120   : > { %v941_v43 = vadd.f32 %v1371_v38, %v901_v41 }
 0x122   : > { %v946_v44 = vmax.f32 %v941_v43, 0.0  ;;  %v947_v45 = vsub.f32 0.0, %v941_v43 }
 0x124   : > { %v948_v46 = vmax.f32 %v947_v45, 0.0  ;;  %1387 = vmatmul.mubr.msk.f32.vlgmr.msra.gmra.mrb[8].mxu0 %vm951_vm2, %v946_v44 }
 0x126   : > { %1382 = vmatmul.mubr.msk.f32.vlgmr.msra.gmra.mrb[8].mxu1 %vm951_vm2, %v948_v46 }
 0x1f7   : > { %v1101_v47 = vpop.f32.mrb[8].mxu0 }
 0x1f8   : > { %v1388_v48 = vpop.f32.mrb[9].mxu0 }
 0x1f9   : > { %v1025_v49 = vpop.f32.mrb[8].mxu1 }
 0x1fa   : > { %v1102_v52 = vadd.f32 %v1101_v47, %v1025_v49  ;;  %v1383_v53 = vpop.f32.mrb[9].mxu1 }
 0x1fc   : > { %v1129_v56 = vadd.f32 %v1282_v50, %v1102_v52  ;;  %v1110_v57 = vadd.f32 %v1280_v51, %v1102_v52  ;;  %v1138_v60 = vadd.f32 %v1283_v54, %v1102_v52  ;;  %v1120_v61 = vadd.f32 %v1281_v55, %v1102_v52 }
 0x1fe   : > { %v1130_v58 = vsel %vm1111_vm3, %v1129_v56, -inf  ;;  %v1112_v59 = vsel %vm1111_vm3, %v1110_v57, -inf  ;;  %v1139_v62 = vsel %vm1111_vm3, %v1138_v60, -inf  ;;  %v1121_v63 = vsel %vm1111_vm3, %v1120_v61, -inf }
 0x1ff   : > { %1131 = vmax.xlane.f32.xlu1 %v1130_v58  ;;  %1113 = vmax.xlane.f32.xlu0 %v1112_v59 }
 0x203   : > { %1140 = vmax.xlane.f32.xlu1 %v1139_v62  ;;  %1122 = vmax.xlane.f32.xlu0 %v1121_v63 }
 0x28c   : > { %v1132_v0 = vpop.xlane.xlu1 %1131  ;;  %v1114_v1 = vpop.xlane.xlu0 %1113 }
 0x290   : > { %v1123_v2 = vpop.xlane.xlu0 %1122  ;;  %v1141_v4 = vpop.xlane.xlu1 %1140 }
 0x291   : > { %v1143_v3 = vsel %vm1142_vm4, %v1114_v1, %v1123_v2 }
 0x292   : > { %v1145_v5 = vsel %vm1144_vm5, %v1143_v3, %v1132_v0 }
 0x293   : > { %v1147_v6 = vsel %vm1146_vm6, %v1145_v5, %v1141_v4 }
 0x294   : > { %1149 = vst.msk [vmem:[%s249_s19] sm:$0xff] %vm1148_vm7, %v1147_v6 }
 0x295 PF: > { %s16_s21 = sadd.s32 1, %s1470_s21  }
 0x296   : > { %p13_p4 = scmp.ge.s32.totalorder %s16_s21, 4  }
 0x298   :  { %15 = sbr.rel (!%p13_p4) target bundleno = 1 (0x1), region = 74 }

</bundles_post_ra>
